<compile_context>
chip_gen: v5e
topology: v5e:2x2
jax: 0.10.0
libtpu: 0.0.40
codegen_flags: <defaults>
</compile_context>

<pallas_src>
import functools

import jax
import jax.numpy as jnp
from jax import lax
from jax.experimental import pallas as pl
from jax.experimental.pallas import tpu as pltpu


def _hash_keep_mask(pos, seed_u32, p, mask_dtype):
    """Counter-based bernoulli(1 - p) scaled mask from flat positions.

    Returns an array of mask_dtype with values in {0, 1/(1-p)}."""
    h = pos.astype(jnp.uint32) * jnp.uint32(0x9E3779B1)
    h = h + seed_u32 * jnp.uint32(0x85EBCA77)
    # murmur3 fmix32 finalizer for avalanche.
    h = h ^ (h >> jnp.uint32(16))
    h = h * jnp.uint32(0x85EBCA6B)
    h = h ^ (h >> jnp.uint32(13))
    h = h * jnp.uint32(0xC2B2AE35)
    h = h ^ (h >> jnp.uint32(16))
    # keep  <=>  uniform(0,1) < (1 - p), decided on the top 24 bits.
    keep_thresh = jnp.int32(int(round((1.0 - p) * (1 << 24))))
    keep = (h >> jnp.uint32(8)).astype(jnp.int32) < keep_thresh
    inv_keep = jnp.asarray(1.0 / (1.0 - p), dtype=mask_dtype)
    zero = jnp.asarray(0.0, dtype=mask_dtype)
    return jnp.where(keep, inv_keep, zero)


def _vd_kernel_collapsed(seed_ref, x_ref, o_ref, *, p, native):
    """Fast path: whole batch in the block. x_ref / o_ref: (B, R_TILE, C)."""
    r = pl.program_id(0)
    _, rt, c = x_ref.shape
    row = lax.broadcasted_iota(jnp.int32, (rt, c), 0)
    col = lax.broadcasted_iota(jnp.int32, (rt, c), 1)
    pos = (r * rt + row) * c + col                 # global flat mask position
    mask_dtype = o_ref.dtype if native else jnp.float32
    mask = _hash_keep_mask(pos, seed_ref[0].astype(jnp.uint32), p, mask_dtype)
    if native:
        o_ref[...] = x_ref[...] * mask[None, :, :]
    else:
        o_ref[...] = (x_ref[...].astype(jnp.float32)
                      * mask[None, :, :]).astype(o_ref.dtype)


def _vd_kernel_batched(seed_ref, x_ref, o_ref, mask_ref, *, p, native):
    """Fallback: grid (row_tiles, B), batch innermost and 'arbitrary'.

    mask_ref persists across grid steps; it is generated once per row tile at
    b == 0 and reused for every batch step (shared-across-batch property)."""
    r = pl.program_id(0)
    b = pl.program_id(1)
    rt, c = mask_ref.shape

    @pl.when(b == 0)
    def _():
        row = lax.broadcasted_iota(jnp.int32, (rt, c), 0)
        col = lax.broadcasted_iota(jnp.int32, (rt, c), 1)
        pos = (r * rt + row) * c + col
        mask_ref[...] = _hash_keep_mask(
            pos, seed_ref[0].astype(jnp.uint32), p, mask_ref.dtype)

    m = mask_ref[...][None, :, :]
    if native:
        o_ref[...] = x_ref[...] * m
    else:
        o_ref[...] = (x_ref[...].astype(jnp.float32) * m).astype(o_ref.dtype)


def _tpu_generation():
    """Coarse TPU generation from device_kind; defaults to the tightest VMEM."""
    try:
        kind = jax.devices()[0].device_kind.lower()
    except Exception:
        kind = ""
    if "v5" in kind:
        return 5
    if "v6" in kind:
        return 6
    return 7  # v7x or unknown: assume 64 MiB physical VMEM per TensorCore.


def variational_dropout(x, *, p=0.5, seed=0, training=True):
    """Pallas implementation of VariationalDropout.forward (one forward call)."""
    if not training:
        return x
    assert 0.0 <= p < 1.0, "p must be in [0, 1)"
    assert x.ndim == 3, "expected (batch, seq, hidden)"

    B, S, H = x.shape
    n = S * H
    itemsize = jnp.dtype(x.dtype).itemsize

    # ---- lane-dense (R, C) view of the S*H mask positions, C % 128 == 0 ----
    if H % 128 == 0:
        R, C, pad = S, H, 0
    else:
        C = 128
        R = pl.cdiv(n, C)
        pad = R * C - n
    if pad:
        x2 = jnp.pad(x.reshape(B, n), ((0, 0), (0, pad))).reshape(B, R, C)
    else:
        x2 = x.reshape(B, R, C)

    # ---- generation-aware VMEM budget & compute dtype ----------------------
    gen = _tpu_generation()
    if gen in (5, 6):                       # 128 MiB physical VMEM
        vmem_limit = 64 * 1024 * 1024
        budget = 48 * 1024 * 1024
    else:                                   # v7x: 64 MiB physical VMEM per TC
        vmem_limit = 32 * 1024 * 1024
        budget = 24 * 1024 * 1024

    native = (x.dtype == jnp.bfloat16) and gen != 5   # v5e VPU has no bf16 VALU
    mask_dtype = x.dtype if native else jnp.float32
    mask_itemsize = jnp.dtype(mask_dtype).itemsize

    sublane = {4: 8, 2: 16, 1: 32}.get(itemsize, 8)   # (sublane, 128) tiling

    def _round_tile(rows):
        """Legal row-tile: full R, or a multiple of the sublane granule."""
        if rows >= R:
            return R
        rows = max(sublane, (rows // sublane) * sublane)
        return min(rows, R)

    seed_arr = jnp.asarray([seed], dtype=jnp.int32)
    cost = pl.CostEstimate(flops=B * R * C, transcendentals=0,
                           bytes_accessed=2 * B * R * C * itemsize)

    # Per-mask-row footprint for the collapsed path: double-buffered in + out
    # blocks (4 * B * itemsize), the mask, and headroom for the hash temps.
    row_bytes_collapsed = C * (4 * B * itemsize + mask_itemsize + 16)
    collapsed = row_bytes_collapsed * min(R, sublane) <= budget

    if collapsed:
        r_tile = _round_tile(max(1, budget // row_bytes_collapsed))
        # v7x megacore: prefer >= 2 parallel row tiles when R allows it.
        if r_tile == R and R >= 2 * sublane:
            half = ((pl.cdiv(R, 2) + sublane - 1) // sublane) * sublane
            if half < R:
                r_tile = half
        n_row_tiles = pl.cdiv(R, r_tile)

        out2 = pl.pallas_call(
            functools.partial(_vd_kernel_collapsed, p=p, native=native),
            out_shape=jax.ShapeDtypeStruct((B, R, C), x.dtype),
            grid=(n_row_tiles,),
            in_specs=[
                pl.BlockSpec(memory_space=pltpu.MemorySpace.SMEM),   # seed
                pl.BlockSpec((B, r_tile, C), lambda r: (0, r, 0)),   # x tile
            ],
            out_specs=pl.BlockSpec((B, r_tile, C), lambda r: (0, r, 0)),
            input_output_aliases={1: 0},                             # x -> out
            cost_estimate=cost,
            compiler_params=pltpu.CompilerParams(
                dimension_semantics=("parallel",),
                vmem_limit_bytes=vmem_limit),
        )(seed_arr, x2)
    else:
        # Fallback for very large B * tile footprints.  Batch axis must stay
        # innermost and "arbitrary": the b == 0 gate fills the mask scratch.
        row_bytes = C * (4 * itemsize + mask_itemsize + 16)
        r_tile = _round_tile(max(1, budget // row_bytes))
        n_row_tiles = pl.cdiv(R, r_tile)

        out2 = pl.pallas_call(
            functools.partial(_vd_kernel_batched, p=p, native=native),
            out_shape=jax.ShapeDtypeStruct((B, R, C), x.dtype),
            grid=(n_row_tiles, B),
            in_specs=[
                pl.BlockSpec(memory_space=pltpu.MemorySpace.SMEM),
                pl.BlockSpec((1, r_tile, C), lambda r, b: (b, r, 0)),
            ],
            out_specs=pl.BlockSpec((1, r_tile, C), lambda r, b: (b, r, 0)),
            scratch_shapes=[pltpu.VMEM((r_tile, C), mask_dtype)],    # shared mask
            input_output_aliases={1: 0},
            cost_estimate=cost,
            compiler_params=pltpu.CompilerParams(
                dimension_semantics=("parallel", "arbitrary"),
                vmem_limit_bytes=vmem_limit),
        )(seed_arr, x2)

    if pad:
        return out2.reshape(B, R * C)[:, :n].reshape(B, S, H)
    return out2.reshape(B, S, H)


if __name__ == "__main__":
    key = jax.random.PRNGKey(0)
    p = 0.5
    scale = 1.0 / (1.0 - p)

    # --- case 1: f32, S*H a multiple of 128 (no padding) -------------------
    B, S, H = 2, 8, 32
    x = jax.random.normal(key, (B, S, H), dtype=jnp.float32)

    y = jax.block_until_ready(variational_dropout(x, p=p, seed=1234, training=True))
    y_eval = jax.block_until_ready(variational_dropout(x, p=p, seed=1234, training=False))

    assert y.shape == x.shape and y.dtype == x.dtype
    assert bool(jnp.all(y_eval == x))

    # Recover the effective mask from batch 0; values must be {0, 1/(1-p)}.
    ratio = jnp.where(jnp.abs(x[0]) > 1e-12, y[0] / x[0], 0.0)
    is_zero = jnp.abs(ratio) < 1e-6
    is_scale = jnp.abs(ratio - scale) < 1e-4
    assert bool(jnp.all(is_zero | is_scale)), "mask values must be {0, 1/(1-p)}"

    # Same mask shared across the batch (variational dropout property).
    mask = jnp.where(is_scale, scale, 0.0)
    assert bool(jnp.allclose(y[1], x[1] * mask, atol=1e-5))

    # Keep fraction in the right ballpark of (1 - p).
    frac = float(jnp.mean(is_scale.astype(jnp.float32)))
    assert 0.2 < frac < 0.8, f"unexpected keep fraction {frac}"

    # Determinism: same seed -> same mask.
    y2 = jax.block_until_ready(variational_dropout(x, p=p, seed=1234, training=True))
    assert bool(jnp.all(y2 == y))

    # --- case 2: f32, H % 128 != 0 and S*H % 128 != 0 (padding path) -------
    Bp, Sp, Hp = 2, 8, 24          # S*H = 192 -> padded to 256 lanes
    xp = jax.random.normal(jax.random.PRNGKey(1), (Bp, Sp, Hp), dtype=jnp.float32)
    yp = jax.block_until_ready(variational_dropout(xp, p=p, seed=7, training=True))
    assert yp.shape == xp.shape and yp.dtype == xp.dtype
    ratio_p = jnp.where(jnp.abs(xp[0]) > 1e-12, yp[0] / xp[0], 0.0)
    ok_p = (jnp.abs(ratio_p) < 1e-6) | (jnp.abs(ratio_p - scale) < 1e-4)
    assert bool(jnp.all(ok_p))
    mask_p = jnp.where(jnp.abs(ratio_p - scale) < 1e-4, scale, 0.0)
    assert bool(jnp.allclose(yp[1], xp[1] * mask_p, atol=1e-5))

    # --- case 3: bf16 (exercises the native bf16 hot path on v6e/v7x) ------
    xb = x.astype(jnp.bfloat16)
    yb = jax.block_until_ready(variational_dropout(xb, p=p, seed=42, training=True))
    assert yb.shape == xb.shape and yb.dtype == xb.dtype
    ok_b = (yb == jnp.bfloat16(0)) | (yb == xb * jnp.bfloat16(2.0))
    assert bool(jnp.all(ok_b))
    # Keep/drop pattern shared across the batch where both entries are nonzero.
    both_nz = (xb[0] != 0) & (xb[1] != 0)
    same_pattern = (yb[0] != 0) == (yb[1] != 0)
    assert bool(jnp.all(jnp.where(both_nz, same_pattern, True)))

    print("KERNEL_OK")
</pallas_src>

<mosaic_0001>
module attributes {stable_mosaic.version = 11 : i64} {
  func.func @_vd_kernel_collapsed(%arg0: i32, %arg1: memref<1xi32, #tpu.memory_space<smem>>, %arg2: memref<2x2x128xf32, #tpu.memory_space<vmem>>, %arg3: memref<2x2x128xf32, #tpu.memory_space<vmem>>) attributes {dimension_semantics = [#tpu.dimension_semantics<parallel>], iteration_bounds = array<i64: 1>, scalar_prefetch = 0 : i64, scratch_operands = 0 : i64, tpu.core_type = #tpu.core_type<tc>, window_params = [{transform_indices = @transform_0, window_bounds = array<i64: 1>}, {transform_indices = @transform_1, window_bounds = array<i64: 2, 2, 128>}, {transform_indices = @transform_2, window_bounds = array<i64: 2, 2, 128>}]} {
    %0 = tpu.iota {dimensions = array<i32: 0>} : vector<2x128xi32>
    %1 = tpu.iota {dimensions = array<i32: 1>} : vector<2x128xi32>
    %c2_i32 = arith.constant 2 : i32
    %2 = arith.muli %arg0, %c2_i32 : i32
    %3 = vector.broadcast %2 : i32 to vector<2x128xi32>
    %4 = arith.addi %3, %0 : vector<2x128xi32>
    %c128_i32 = arith.constant 128 : i32
    %5 = vector.broadcast %c128_i32 : i32 to vector<2x128xi32>
    %6 = arith.muli %4, %5 : vector<2x128xi32>
    %7 = arith.addi %6, %1 : vector<2x128xi32>
    %c0 = arith.constant 0 : index
    %8 = memref.load %arg1[%c0] : memref<1xi32, #tpu.memory_space<smem>>
    %c-1640531535_i32 = arith.constant -1640531535 : i32
    %9 = vector.broadcast %c-1640531535_i32 : i32 to vector<2x128xi32>
    %10 = arith.muli %7, %9 : vector<2x128xi32>
    %c-2048144777_i32 = arith.constant -2048144777 : i32
    %11 = arith.muli %8, %c-2048144777_i32 : i32
    %12 = vector.broadcast %11 : i32 to vector<2x128xi32>
    %13 = arith.addi %10, %12 : vector<2x128xi32>
    %c16_i32 = arith.constant 16 : i32
    %14 = vector.broadcast %c16_i32 : i32 to vector<2x128xi32>
    %15 = arith.shrui %13, %14 : vector<2x128xi32>
    %16 = arith.xori %13, %15 : vector<2x128xi32>
    %c-2048144789_i32 = arith.constant -2048144789 : i32
    %17 = vector.broadcast %c-2048144789_i32 : i32 to vector<2x128xi32>
    %18 = arith.muli %16, %17 : vector<2x128xi32>
    %c13_i32 = arith.constant 13 : i32
    %19 = vector.broadcast %c13_i32 : i32 to vector<2x128xi32>
    %20 = arith.shrui %18, %19 : vector<2x128xi32>
    %21 = arith.xori %18, %20 : vector<2x128xi32>
    %c-1028477387_i32 = arith.constant -1028477387 : i32
    %22 = vector.broadcast %c-1028477387_i32 : i32 to vector<2x128xi32>
    %23 = arith.muli %21, %22 : vector<2x128xi32>
    %c16_i32_0 = arith.constant 16 : i32
    %24 = vector.broadcast %c16_i32_0 : i32 to vector<2x128xi32>
    %25 = arith.shrui %23, %24 : vector<2x128xi32>
    %26 = arith.xori %23, %25 : vector<2x128xi32>
    %c8_i32 = arith.constant 8 : i32
    %27 = vector.broadcast %c8_i32 : i32 to vector<2x128xi32>
    %28 = arith.shrui %26, %27 : vector<2x128xi32>
    %c8388608_i32 = arith.constant 8388608 : i32
    %29 = vector.broadcast %c8388608_i32 : i32 to vector<2x128xi32>
    %30 = arith.cmpi slt, %28, %29 : vector<2x128xi32>
    %cst = arith.constant 2.000000e+00 : f32
    %cst_1 = arith.constant 0.000000e+00 : f32
    %31 = vector.broadcast %cst : f32 to vector<2x128xf32>
    %32 = vector.broadcast %cst_1 : f32 to vector<2x128xf32>
    %33 = arith.select %30, %31, %32 : vector<2x128xi1>, vector<2x128xf32>
    %c0_2 = arith.constant 0 : index
    %c0_3 = arith.constant 0 : index
    %c0_4 = arith.constant 0 : index
    %34 = vector.load %arg2[%c0_2, %c0_3, %c0_4] : memref<2x2x128xf32, #tpu.memory_space<vmem>>, vector<2x2x128xf32>
    %35 = vector.shape_cast %33 : vector<2x128xf32> to vector<1x2x128xf32>
    %36 = vector.broadcast %35 : vector<1x2x128xf32> to vector<2x2x128xf32>
    %37 = arith.mulf %34, %36 : vector<2x2x128xf32>
    %c0_5 = arith.constant 0 : index
    %c0_6 = arith.constant 0 : index
    %c0_7 = arith.constant 0 : index
    %38 = vector.load %arg3[%c0_5, %c0_6, %c0_7] : memref<2x2x128xf32, #tpu.memory_space<vmem>>, vector<2x2x128xf32>
    tpu.vector_store %arg3[%c0_5, %c0_6, %c0_7], %37 {strides = array<i32>} : memref<2x2x128xf32, #tpu.memory_space<vmem>>, vector<2x2x128xf32>,
    return
  }
  func.func @transform_0(%arg0: i32) -> i32 {
    %c0_i32 = arith.constant 0 : i32
    %c0_i32_0 = arith.constant 0 : i32
    return %c0_i32 : i32
  }
  func.func @transform_1(%arg0: i32) -> (i32, i32, i32) {
    %c0_i32 = arith.constant 0 : i32
    %c0_i32_0 = arith.constant 0 : i32
    %c0_i32_1 = arith.constant 0 : i32
    return %c0_i32, %arg0, %c0_i32_0 : i32, i32, i32
  }
  func.func @transform_2(%arg0: i32) -> (i32, i32, i32) {
    %c0_i32 = arith.constant 0 : i32
    %c0_i32_0 = arith.constant 0 : i32
    %c0_i32_1 = arith.constant 0 : i32
    return %c0_i32, %arg0, %c0_i32_0 : i32, i32, i32
  }
}

</mosaic_0001>

<bundles_post_ra>
// kernel: tpu_custom_call.1
= control target key start
LH: loop header
LB: loop body
LE: loop exit
PB: predicated region body
PF: predicated region fallthrough
CT: control target
= control target key end

     0   :  { %8 = vsyncpa [#allocation4], 0  ;;  %s171_s0 = inlined_call_operand.<no memory space> [shape: s32[1], index: 0, kind: input, shape index: {}]   ;;  %s172_s1 = inlined_call_operand.hbm [shape: f32[2,2,128], index: 1, kind: input, shape index: {}, may-alias: {1,2}]   ;;  %s173_s2 = inlined_call_operand.hbm [shape: f32[2,2,128], index: 2, kind: output, shape index: {}, may-alias: {1,2}]  }
   0x1   :  { %9 = vsyncpa [#allocation5], 0  ;;  %s16_s11 = sshll.u32 %s172_s1, 4  ;;  %s136_s12 = smov [#allocation3]   ;;  %s17_s11 = int_to_ptr.hbm [resolvable:$true] %s16_s11 }
   0x2   :  { %s18_s13 = sshll.u32 %s136_s12, 4  ;;  %s137_s14 = smov 32   ;;  %s19_s13 = int_to_ptr.vmem [resolvable:$true] %s18_s13 }
   0x3   :  { %s138_s15 = smov 2  }
   0x4   :  { %24 = dma.hbm_to_vmem [thread:$0]  %s17_s11, 64, %s19_s13, [#allocation4], %s137_s14, %s137_s14, %s138_s15  }
   0x5   :  { %132 = dma.done.wait [#allocation4], 64  }
   0x6   :  { %133 = vsyncadd [#allocation4], 4294967232  ;;  %v29_v0 = vlaneseq  ;;  %s40_s18 = smul.u32 2246822519, %s171_s0  ;;  %v54_v17 = vld [vmem:[#allocation3] sm:$0x3] }
   0x7   :  { %v55_v18 = vld [vmem:[#allocation3 + $0x2] sm:$0x3]  ;;  %s139_s1 = smov [#allocation6]   ;;  %s66_s21 = sshll.u32 %s173_s2, 4  ;;  %v140_v19 = vmov 0.0   ;;  %s67_s21 = int_to_ptr.hbm [resolvable:$true] %s66_s21 }
   0x8   :  { %v30_v1 = vshrl.u32 %v29_v0, 7  ;;  %v32_v2 = vand.u32 127, %v29_v0  ;;  %v41_v5 = vstv %s40_s18  ;;  %s64_s19 = sshll.u32 %s139_s1, 4  ;;  %s65_s19 = int_to_ptr.vmem [resolvable:$true] %s64_s19 }
   0xa   :  { %v36_v3 = vmul.u32 128, %v30_v1 }
   0xc   :  { %v37_v4 = vadd.s32 %v36_v3, %v32_v2 }
   0xe   :  { %v39_v6 = vmul.u32 2654435761, %v37_v4 }
  0x10   :  { %v42_v7 = vadd.s32 %v41_v5, %v39_v6 }
  0x12   :  { %v43_v8 = vshrl.u32 %v42_v7, 16 }
  0x14   :  { %v44_v9 = vxor.u32 %v43_v8, %v42_v7 }
  0x16   :  { %v45_v10 = vmul.u32 2246822507, %v44_v9 }
  0x18   :  { %v46_v11 = vshrl.u32 %v45_v10, 13 }
  0x1a   :  { %v47_v12 = vxor.u32 %v46_v11, %v45_v10 }
  0x1c   :  { %v48_v13 = vmul.u32 3266489909, %v47_v12 }
  0x1e   :  { %v49_v14 = vshrl.u32 %v48_v13, 16 }
  0x20   :  { %v50_v15 = vxor.u32 %v49_v14, %v48_v13 }
  0x22   :  { %v51_v16 = vshrl.u32 %v50_v15, 8 }
  0x24   :  { %vm52_vm0 = vcmp.lt.s32.totalorder %v51_v16, 8388608 }
  0x25   :  { %v53_v20 = vsel %vm52_vm0, 2.0, %v140_v19 }
  0x26   :  { %v56_v21 = vmul.f32 %v54_v17, %v53_v20  ;;  %v57_v22 = vmul.f32 %v55_v18, %v53_v20 }
  0x28   :  { %58 = vst [vmem:[#allocation6] sm:$0x3] %v56_v21 }
  0x29   :  { %59 = vst [vmem:[#allocation6 + $0x2] sm:$0x3] %v57_v22 }
  0x2a   :  { %72 = dma.vmem_to_hbm [thread:$0]  %s65_s19, 64, %s67_s21, [#allocation5], %s137_s14, %s137_s14, %s138_s15  }
  0x2b   :  { %134 = dma.done.wait [#allocation5], 64  }
  0x2c   :  { %135 = vsyncadd [#allocation5], 4294967232 }
  0x2d   :  { %77 = vsyncpa [#allocation4], 1 }
  0x2e   :  { %78 = vsyncpa [#allocation5], 1 }

</bundles_post_ra>
